<compile_context>
chip_gen: v5e
topology: v5e:2x2
jax: 0.10.0
libtpu: 0.0.40
codegen_flags: <defaults>
</compile_context>

<pallas_src>
import jax
import jax.numpy as jnp
from jax.experimental import pallas as pl
from jax.experimental.pallas import tpu as pltpu

_LANES = 128
_SUBLANES = 8


def _round_up(x, m):
    return ((x + m - 1) // m) * m


# ---------------------------------------------------------------------------
# General path: tiled matmul (M tiled, weight/bias resident, dot_general).
# ---------------------------------------------------------------------------
def _linear_matmul_kernel(x_ref, w_ref, b_ref, o_ref):
    # x_ref: (TM, in_dim), w_ref: (out_dim, in_dim), b_ref: (1, out_dim)
    # Contract last dim of x with last dim of w -> (TM, out_dim); no w.T in VMEM.
    acc = jax.lax.dot_general(
        x_ref[...],
        w_ref[...],
        dimension_numbers=(((1,), (1,)), ((), ())),
        preferred_element_type=jnp.float32,
    )
    o_ref[...] = (acc + b_ref[...]).astype(o_ref.dtype)


def _linear_matmul(x, weight, bias, *, tm=512):
    n, in_dim = x.shape
    out_dim = weight.shape[0]

    # Row tile: multiple of 8 sublanes, capped at `tm`; pad N so the grid divides evenly
    # (padded rows are zeros and are sliced off afterwards -> no ragged/OOB tiles).
    tile_m = min(tm, _round_up(n, _SUBLANES))
    n_pad = _round_up(n, tile_m)
    if n_pad != n:
        x = jnp.pad(x, ((0, n_pad - n), (0, 0)))

    b2d = bias.reshape(1, out_dim)
    grid = (n_pad // tile_m,)

    y = pl.pallas_call(
        _linear_matmul_kernel,
        out_shape=jax.ShapeDtypeStruct((n_pad, out_dim), x.dtype),
        grid_spec=pl.GridSpec(
            grid=grid,
            in_specs=[
                pl.BlockSpec((tile_m, in_dim), lambda i: (i, 0)),     # x tile marches over M
                pl.BlockSpec((out_dim, in_dim), lambda i: (0, 0)),    # weight resident
                pl.BlockSpec((1, out_dim), lambda i: (0, 0)),         # bias resident
            ],
            out_specs=pl.BlockSpec((tile_m, out_dim), lambda i: (i, 0)),
        ),
        compiler_params=pltpu.CompilerParams(
            dimension_semantics=("parallel",),  # independent M tiles -> megacore-shardable
        ),
    )(x, weight, b2d)
    return y[:n]


# ---------------------------------------------------------------------------
# Fast path for in_dim == 1 and out_dim == 1: pure VPU fused multiply-add on a
# lane-dense (rows, 128) view. Scalars (w, b) live in SMEM.
# ---------------------------------------------------------------------------
def _linear_scalar_kernel(w_ref, b_ref, x_ref, o_ref):
    # w_ref, b_ref: (1, 1) f32 in SMEM; x_ref/o_ref: (TR, 128) lane-dense VMEM tiles.
    w = w_ref[0, 0]
    b = b_ref[0, 0]
    o_ref[...] = (x_ref[...] * w + b).astype(o_ref.dtype)


def _linear_elementwise_1x1(x, weight, bias):
    n = x.shape[0]
    flat = x.reshape(-1)

    # Lane-dense 2D view: 128 lanes wide, row count a multiple of 8 sublanes.
    rows = _round_up(pl.cdiv(n, _LANES), _SUBLANES)
    tile_r = min(1024, rows)                 # 1024x128 f32 tile = 512 KiB per buffer
    rows = _round_up(rows, tile_r)
    n_pad = rows * _LANES
    if n_pad != n:
        flat = jnp.pad(flat, (0, n_pad - n))
    x2d = flat.reshape(rows, _LANES)

    w11 = weight.reshape(1, 1).astype(jnp.float32)
    b11 = bias.reshape(1, 1).astype(jnp.float32)

    y2d = pl.pallas_call(
        _linear_scalar_kernel,
        out_shape=jax.ShapeDtypeStruct((rows, _LANES), x.dtype),
        grid_spec=pl.GridSpec(
            grid=(rows // tile_r,),
            in_specs=[
                pl.BlockSpec(memory_space=pltpu.MemorySpace.SMEM),     # w scalar
                pl.BlockSpec(memory_space=pltpu.MemorySpace.SMEM),     # b scalar
                pl.BlockSpec((tile_r, _LANES), lambda i: (i, 0)),      # x tile
            ],
            out_specs=pl.BlockSpec((tile_r, _LANES), lambda i: (i, 0)),
        ),
        compiler_params=pltpu.CompilerParams(
            dimension_semantics=("parallel",),
        ),
    )(w11, b11, x2d)

    return y2d.reshape(-1)[:n].reshape(n, 1)


def linear_forward(x, weight, bias):
    """y = x @ weight.T + bias, matching torch.nn.Linear semantics."""
    in_dim = x.shape[1]
    out_dim = weight.shape[0]
    if in_dim == 1 and out_dim == 1:
        return _linear_elementwise_1x1(x, weight, bias)
    return _linear_matmul(x, weight, bias)


class LinearRegressionModel:
    """JAX/Pallas port of the PyTorch LinearRegressionModel."""

    def __init__(self, input_dim, output_dim, key):
        # Deterministic init mimicking torch.nn.Linear default:
        # U(-1/sqrt(in_features), +1/sqrt(in_features)) for both weight and bias.
        k_w, k_b = jax.random.split(key)
        bound = 1.0 / jnp.sqrt(jnp.array(input_dim, jnp.float32))
        self.weight = jax.random.uniform(
            k_w, (output_dim, input_dim), jnp.float32, -bound, bound
        )
        self.bias = jax.random.uniform(
            k_b, (output_dim,), jnp.float32, -bound, bound
        )

    def __call__(self, x):
        return linear_forward(x, self.weight, self.bias)


if __name__ == "__main__":
    input_dim = 1
    output_dim = 1
    batch = 8

    key = jax.random.PRNGKey(0)
    k_params, k_x, k_extra = jax.random.split(key, 3)

    # Spec shape (1-in / 1-out regression): exercises the lane-dense VPU path.
    model = LinearRegressionModel(input_dim, output_dim, k_params)
    x = jax.random.normal(k_x, (batch, input_dim), jnp.float32)
    y = jax.block_until_ready(model(x))
    y_ref = x @ model.weight.T + model.bias
    assert y.shape == (batch, output_dim)
    assert jnp.allclose(y, y_ref, atol=1e-5, rtol=1e-5)

    # Also exercise the general tiled-matmul path (ragged N, multi-dim features).
    n2, d_in2, d_out2 = 300, 8, 4
    kw, kb, kx = jax.random.split(k_extra, 3)
    w2 = jax.random.normal(kw, (d_out2, d_in2), jnp.float32)
    b2 = jax.random.normal(kb, (d_out2,), jnp.float32)
    x2 = jax.random.normal(kx, (n2, d_in2), jnp.float32)
    y2 = jax.block_until_ready(linear_forward(x2, w2, b2))
    y2_ref = x2 @ w2.T + b2
    assert y2.shape == (n2, d_out2)
    assert jnp.allclose(y2, y2_ref, atol=1e-4, rtol=1e-4)

    print("KERNEL_OK")
</pallas_src>

<mosaic_0001>
module attributes {stable_mosaic.version = 11 : i64} {
  func.func @_linear_scalar_kernel(%arg0: i32, %arg1: memref<1x1xf32, #tpu.memory_space<smem>>, %arg2: memref<1x1xf32, #tpu.memory_space<smem>>, %arg3: memref<8x128xf32, #tpu.memory_space<vmem>>, %arg4: memref<8x128xf32, #tpu.memory_space<vmem>>) attributes {dimension_semantics = [#tpu.dimension_semantics<parallel>], iteration_bounds = array<i64: 1>, scalar_prefetch = 0 : i64, scratch_operands = 0 : i64, tpu.core_type = #tpu.core_type<tc>, window_params = [{transform_indices = @transform_0, window_bounds = array<i64: 1, 1>}, {transform_indices = @transform_1, window_bounds = array<i64: 1, 1>}, {transform_indices = @transform_2, window_bounds = array<i64: 8, 128>}, {transform_indices = @transform_3, window_bounds = array<i64: 8, 128>}]} {
    %c0 = arith.constant 0 : index
    %c0_0 = arith.constant 0 : index
    %0 = memref.load %arg1[%c0, %c0_0] : memref<1x1xf32, #tpu.memory_space<smem>>
    %c0_1 = arith.constant 0 : index
    %c0_2 = arith.constant 0 : index
    %1 = memref.load %arg2[%c0_1, %c0_2] : memref<1x1xf32, #tpu.memory_space<smem>>
    %c0_3 = arith.constant 0 : index
    %c0_4 = arith.constant 0 : index
    %2 = vector.load %arg3[%c0_3, %c0_4] : memref<8x128xf32, #tpu.memory_space<vmem>>, vector<8x128xf32>
    %3 = vector.broadcast %0 : f32 to vector<8x128xf32>
    %4 = arith.mulf %2, %3 : vector<8x128xf32>
    %5 = vector.broadcast %1 : f32 to vector<8x128xf32>
    %6 = arith.addf %4, %5 : vector<8x128xf32>
    %c0_5 = arith.constant 0 : index
    %c0_6 = arith.constant 0 : index
    %7 = vector.load %arg4[%c0_5, %c0_6] : memref<8x128xf32, #tpu.memory_space<vmem>>, vector<8x128xf32>
    tpu.vector_store %arg4[%c0_5, %c0_6], %6 {strides = array<i32>} : memref<8x128xf32, #tpu.memory_space<vmem>>, vector<8x128xf32>,
    return
  }
  func.func @transform_0(%arg0: i32) -> (i32, i32) {
    %c0_i32 = arith.constant 0 : i32
    %c0_i32_0 = arith.constant 0 : i32
    %c0_i32_1 = arith.constant 0 : i32
    return %c0_i32, %c0_i32_0 : i32, i32
  }
  func.func @transform_1(%arg0: i32) -> (i32, i32) {
    %c0_i32 = arith.constant 0 : i32
    %c0_i32_0 = arith.constant 0 : i32
    %c0_i32_1 = arith.constant 0 : i32
    return %c0_i32, %c0_i32_0 : i32, i32
  }
  func.func @transform_2(%arg0: i32) -> (i32, i32) {
    %c0_i32 = arith.constant 0 : i32
    %c0_i32_0 = arith.constant 0 : i32
    return %arg0, %c0_i32 : i32, i32
  }
  func.func @transform_3(%arg0: i32) -> (i32, i32) {
    %c0_i32 = arith.constant 0 : i32
    %c0_i32_0 = arith.constant 0 : i32
    return %arg0, %c0_i32 : i32, i32
  }
}

</mosaic_0001>

<bundles_post_ra>
// kernel: tpu_custom_call.1
= control target key start
LH: loop header
LB: loop body
LE: loop exit
PB: predicated region body
PF: predicated region fallthrough
CT: control target
= control target key end

     0   :  { %10 = vsyncpa [#allocation5], 0  ;;  %s144_s0 = inlined_call_operand.<no memory space> [shape: f32[1,1], index: 0, kind: input, shape index: {}]   ;;  %s145_s1 = inlined_call_operand.<no memory space> [shape: f32[1,1], index: 1, kind: input, shape index: {}]   ;;  %s146_s2 = inlined_call_operand.hbm [shape: f32[8,128], index: 2, kind: input, shape index: {}]   ;;  %s147_s3 = inlined_call_operand.hbm [shape: f32[8,128], index: 3, kind: output, shape index: {}]  }
   0x1   :  { %11 = vsyncpa [#allocation6], 0  ;;  %s21_s14 = sshll.u32 %s146_s2, 4  ;;  %s110_s15 = smov [#allocation4]   ;;  %s22_s14 = int_to_ptr.hbm [resolvable:$true] %s21_s14 }
   0x2   :  { %s23_s16 = sshll.u32 %s110_s15, 4  ;;  %s24_s16 = int_to_ptr.vmem [resolvable:$true] %s23_s16 }
   0x3   :  { %26 = dma.hbm_to_vmem [thread:$0]  %s22_s14, 128, %s24_s16, [#allocation5]  }
   0x4   :  { %106 = dma.done.wait [#allocation5], 128  }
   0x5   :  { %107 = vsyncadd [#allocation5], 4294967168  ;;  %v34_v0 = vstv %s144_s0  ;;  %v33_v1 = vld [vmem:[#allocation4] sm:$0xff]  ;;  %v36_v2 = vstv %s145_s1  ;;  %s111_s21 = smov [#allocation7]   ;;  %s46_s24 = sshll.u32 %s147_s3, 4  ;;  %s47_s24 = int_to_ptr.hbm [resolvable:$true] %s46_s24 }
   0x6   :  { %s44_s22 = sshll.u32 %s111_s21, 4  ;;  %v35_v3 = vmul.f32 %v34_v0, %v33_v1  ;;  %s45_s22 = int_to_ptr.vmem [resolvable:$true] %s44_s22 }
   0x8   :  { %v37_v4 = vadd.f32 %v36_v2, %v35_v3 }
   0xa   :  { %38 = vst [vmem:[#allocation7] sm:$0xff] %v37_v4 }
   0xb   :  { %49 = dma.vmem_to_hbm [thread:$0]  %s45_s22, 128, %s47_s24, [#allocation6]  }
   0xc   :  { %108 = dma.done.wait [#allocation6], 128  }
   0xd   :  { %109 = vsyncadd [#allocation6], 4294967168 }
   0xe   :  { %54 = vsyncpa [#allocation5], 1 }
   0xf   :  { %55 = vsyncpa [#allocation6], 1 }

</bundles_post_ra>
